<compile_context>
chip_gen: v6e
topology: v6e:2x2x1
jax: 0.10.0
libtpu: 0.0.40
codegen_flags: <defaults>
</compile_context>

<pallas_src>
import jax
import jax.numpy as jnp
from jax import lax
from jax.experimental import pallas as pl
from jax.experimental.pallas import tpu as pltpu

# ---- small synthetic shapes consistent with the module ----
B = 2            # batch
L = 256          # padded audio length (samples)
K = 32           # feature-encoder frame size (kernel == stride)
T = L // K       # resulting sequence length
H = 32           # hidden_size stand-in (real model: 1024)
O = 16           # Wav2VecEncoderConfig().output_size stand-in

BB = 8           # batch block (sublane-filling)
OP = 128         # lane-padded output width (lane-dense store)


# -------------------- single fused kernel --------------------
def _wav2vec_kernel(audio_ref, len_ref, wf_ref, wo_ref, slab_ref, out_ref):
    # ---- Wav2Vec2Processor: masked zero-mean / unit-variance (eps=1e-7) ----
    x = audio_ref[...]                                    # (BB, L) f32
    lens_i = len_ref[...]                                 # (BB, 1) i32
    inv_len = pl.reciprocal(lens_i.astype(jnp.float32))   # exact; computed once
    idx = lax.broadcasted_iota(jnp.int32, x.shape, 1)     # (BB, L)
    mask = (idx < lens_i).astype(jnp.float32)             # attention mask
    mean = jnp.sum(x * mask, axis=1, keepdims=True) * inv_len
    centered = (x - mean) * mask
    var = jnp.sum(centered * centered, axis=1, keepdims=True) * inv_len
    xn = centered * lax.rsqrt(var + 1e-7)                 # (BB, L); padding stays 0

    # ---- packed small params: rows of the (8,128) slab ----
    bf = slab_ref[0:1, 0:H]                               # (1, H)
    gamma = slab_ref[1:2, 0:H]                            # (1, H)
    beta = slab_ref[2:3, 0:H]                             # (1, H)
    bo = slab_ref[3:4, :]                                 # (1, OP)

    # ---- stand-in classifier + Pooling.MEAN, folded via linearity ----
    # mean_t(frames @ wf + bf) == xn @ (tile(wf,(T,1))/T) + bf
    pooled = jnp.dot(xn, wf_ref[...],
                     preferred_element_type=jnp.float32) + bf         # (BB, H)

    # ---- dropout: identity in eval mode ----
    # ---- LayerNorm(hidden_size), eps = 1e-5 (PyTorch default) ----
    mu = jnp.mean(pooled, axis=-1, keepdims=True)
    v = jnp.mean((pooled - mu) ** 2, axis=-1, keepdims=True)
    normed = (pooled - mu) * lax.rsqrt(v + 1e-5) * gamma + beta

    # ---- output Linear + tanh (lane-padded to OP) ----
    logits = jnp.dot(normed, wo_ref[...],
                     preferred_element_type=jnp.float32) + bo         # (BB, OP)
    out_ref[...] = jnp.tanh(logits)


# -------------------- wrapper --------------------
def wav2vec_encoder(audio, lengths, params):
    # audio: (B, L, C) — use channel 0, like audio[i][:lengths[i]][:, 0]
    Bi = audio.shape[0]
    audio2d = audio[:, :, 0].astype(jnp.float32)                      # (B, L)

    # pad batch to a multiple of BB sublanes; padded rows get len=L (no NaN)
    BP = ((Bi + BB - 1) // BB) * BB
    audio_p = jnp.zeros((BP, L), jnp.float32).at[:Bi].set(audio2d)
    lens_p = jnp.full((BP, 1), L, jnp.int32).at[:Bi, 0].set(
        lengths.astype(jnp.int32))

    # fold frame-mean into the projection: (L, H); 1/T is exact (T=8)
    wf_eff = jnp.tile(params['wf'], (T, 1)) * (1.0 / T)

    # lane-pad the output projection to OP=128 (zero lanes -> tanh(0)=0)
    wo_p = jnp.zeros((H, OP), jnp.float32).at[:, :O].set(params['wo'])

    # pack bf / gamma / beta / bo into one (8,128) slab -> one DMA
    slab = jnp.zeros((8, 128), jnp.float32)
    slab = slab.at[0, :H].set(params['bf'].reshape(H))
    slab = slab.at[1, :H].set(params['gamma'].reshape(H))
    slab = slab.at[2, :H].set(params['beta'].reshape(H))
    slab = slab.at[3, :O].set(params['bo'].reshape(O))

    out = pl.pallas_call(
        _wav2vec_kernel,
        out_shape=jax.ShapeDtypeStruct((BP, OP), jnp.float32),
        grid_spec=pltpu.PrefetchScalarGridSpec(
            num_scalar_prefetch=0,
            grid=(BP // BB,),
            in_specs=[
                pl.BlockSpec((BB, L), lambda b: (b, 0)),      # audio
                pl.BlockSpec((BB, 1), lambda b: (b, 0)),      # lengths
                pl.BlockSpec((L, H), lambda b: (0, 0)),       # wf_eff
                pl.BlockSpec((H, OP), lambda b: (0, 0)),      # wo (lane-padded)
                pl.BlockSpec((8, 128), lambda b: (0, 0)),     # param slab
            ],
            out_specs=pl.BlockSpec((BB, OP), lambda b: (b, 0)),
        ),
        compiler_params=pltpu.CompilerParams(
            dimension_semantics=("parallel",)),
    )(audio_p, lens_p, wf_eff, wo_p, slab)

    return out[:Bi, :O]


# -------------------- pure-JAX reference (project-then-pool form) --------------------
def _reference(audio, lengths, params):
    audio2d = audio[:, :, 0].astype(jnp.float32)
    lens = lengths.astype(jnp.float32)[:, None]
    idx = jnp.arange(L)[None, :]
    mask = (idx < lengths[:, None]).astype(jnp.float32)
    mean = jnp.sum(audio2d * mask, axis=1, keepdims=True) / lens
    cen = (audio2d - mean) * mask
    var = jnp.sum(cen * cen, axis=1, keepdims=True) / lens
    x = cen / jnp.sqrt(var + 1e-7)
    frames = x.reshape(B, T, K)
    hidden = jnp.einsum('btk,kh->bth', frames, params['wf']) + params['bf']
    pooled = jnp.mean(hidden, axis=1)                     # Pooling.MEAN over all T
    mu = jnp.mean(pooled, axis=-1, keepdims=True)
    v = jnp.mean((pooled - mu) ** 2, axis=-1, keepdims=True)
    nrm = (pooled - mu) / jnp.sqrt(v + 1e-5) * params['gamma'] + params['beta']
    return jnp.tanh(nrm @ params['wo'] + params['bo'])


if __name__ == "__main__":
    key = jax.random.PRNGKey(0)
    k_audio, k_wf, k_bf, k_wo, k_bo = jax.random.split(key, 5)

    audio = jax.random.normal(k_audio, (B, L, 1), dtype=jnp.float32)
    lengths = jnp.array([L, 200], dtype=jnp.int32)

    params = {
        'wf': jax.random.normal(k_wf, (K, H), dtype=jnp.float32) * 0.1,
        'bf': jax.random.normal(k_bf, (1, H), dtype=jnp.float32) * 0.01,
        'gamma': jnp.ones((1, H), dtype=jnp.float32),
        'beta': jnp.zeros((1, H), dtype=jnp.float32),
        'wo': jax.random.normal(k_wo, (H, O), dtype=jnp.float32) * 0.1,
        'bo': jax.random.normal(k_bo, (1, O), dtype=jnp.float32) * 0.01,
    }

    out = jax.block_until_ready(wav2vec_encoder(audio, lengths, params))
    ref = _reference(audio, lengths, params)
    assert out.shape == (B, O)
    assert jnp.allclose(out, ref, atol=1e-5, rtol=1e-5), "mismatch vs JAX reference"
    print("KERNEL_OK")
</pallas_src>

<mosaic_0001>
module attributes {stable_mosaic.version = 11 : i64} {
  func.func @_wav2vec_kernel(%arg0: i32, %arg1: memref<8x256xf32, #tpu.memory_space<vmem>>, %arg2: memref<8x1xi32, #tpu.memory_space<vmem>>, %arg3: memref<256x32xf32, #tpu.memory_space<vmem>>, %arg4: memref<32x128xf32, #tpu.memory_space<vmem>>, %arg5: memref<8x128xf32, #tpu.memory_space<vmem>>, %arg6: memref<8x128xf32, #tpu.memory_space<vmem>>) attributes {dimension_semantics = [#tpu.dimension_semantics<parallel>], iteration_bounds = array<i64: 1>, scalar_prefetch = 0 : i64, scratch_operands = 0 : i64, tpu.core_type = #tpu.core_type<tc>, window_params = [{transform_indices = @transform_0, window_bounds = array<i64: 8, 256>}, {transform_indices = @transform_1, window_bounds = array<i64: 8, 1>}, {pipeline_mode = #tpu.pipeline_mode<synchronous>, transform_indices = @transform_2, window_bounds = array<i64: 256, 32>}, {pipeline_mode = #tpu.pipeline_mode<synchronous>, transform_indices = @transform_3, window_bounds = array<i64: 32, 128>}, {pipeline_mode = #tpu.pipeline_mode<synchronous>, transform_indices = @transform_4, window_bounds = array<i64: 8, 128>}, {transform_indices = @transform_5, window_bounds = array<i64: 8, 128>}]} {
    %c0 = arith.constant 0 : index
    %c0_0 = arith.constant 0 : index
    %0 = vector.load %arg1[%c0, %c0_0] : memref<8x256xf32, #tpu.memory_space<vmem>>, vector<8x256xf32>
    %c0_1 = arith.constant 0 : index
    %c0_2 = arith.constant 0 : index
    %1 = vector.load %arg2[%c0_1, %c0_2] : memref<8x1xi32, #tpu.memory_space<vmem>>, vector<8x1xi32>
    %2 = arith.sitofp %1 : vector<8x1xi32> to vector<8x1xf32>
    %3 = tpu.reciprocal %2 : vector<8x1xf32> -> vector<8x1xf32>
    %4 = tpu.iota {dimensions = array<i32: 1>} : vector<8x256xi32>
    %5 = vector.broadcast %1 : vector<8x1xi32> to vector<8x256xi32>
    %6 = arith.cmpi slt, %4, %5 : vector<8x256xi32>
    %7 = arith.extui %6 : vector<8x256xi1> to vector<8x256xi32>
    %8 = arith.sitofp %7 : vector<8x256xi32> to vector<8x256xf32>
    %9 = arith.mulf %0, %8 : vector<8x256xf32>
    %cst = arith.constant dense<0.000000e+00> : vector<8xf32>
    %10 = vector.multi_reduction <add>, %9, %cst [1] : vector<8x256xf32> to vector<8xf32>
    %11 = vector.shape_cast %10 : vector<8xf32> to vector<8x1xf32>
    %12 = arith.mulf %11, %3 : vector<8x1xf32>
    %13 = vector.broadcast %12 : vector<8x1xf32> to vector<8x256xf32>
    %14 = arith.subf %0, %13 : vector<8x256xf32>
    %15 = arith.mulf %14, %8 : vector<8x256xf32>
    %16 = arith.mulf %15, %15 : vector<8x256xf32>
    %cst_3 = arith.constant dense<0.000000e+00> : vector<8xf32>
    %17 = vector.multi_reduction <add>, %16, %cst_3 [1] : vector<8x256xf32> to vector<8xf32>
    %18 = vector.shape_cast %17 : vector<8xf32> to vector<8x1xf32>
    %19 = arith.mulf %18, %3 : vector<8x1xf32>
    %cst_4 = arith.constant 1.000000e-07 : f32
    %20 = vector.broadcast %cst_4 : f32 to vector<8x1xf32>
    %21 = arith.addf %19, %20 : vector<8x1xf32>
    %22 = math.rsqrt %21 : vector<8x1xf32>
    %23 = vector.broadcast %22 : vector<8x1xf32> to vector<8x256xf32>
    %24 = arith.mulf %15, %23 : vector<8x256xf32>
    %c0_5 = arith.constant 0 : index
    %c0_6 = arith.constant 0 : index
    %25 = vector.load %arg5[%c0_5, %c0_6] : memref<8x128xf32, #tpu.memory_space<vmem>>, vector<1x32xf32>
    %c1 = arith.constant 1 : index
    %c0_7 = arith.constant 0 : index
    %26 = vector.load %arg5[%c1, %c0_7] : memref<8x128xf32, #tpu.memory_space<vmem>>, vector<1x32xf32>
    %c2 = arith.constant 2 : index
    %c0_8 = arith.constant 0 : index
    %27 = vector.load %arg5[%c2, %c0_8] : memref<8x128xf32, #tpu.memory_space<vmem>>, vector<1x32xf32>
    %c3 = arith.constant 3 : index
    %c0_9 = arith.constant 0 : index
    %28 = vector.load %arg5[%c3, %c0_9] : memref<8x128xf32, #tpu.memory_space<vmem>>, vector<1x128xf32>
    %c0_10 = arith.constant 0 : index
    %c0_11 = arith.constant 0 : index
    %29 = vector.load %arg3[%c0_10, %c0_11] : memref<256x32xf32, #tpu.memory_space<vmem>>, vector<256x32xf32>
    %cst_12 = arith.constant dense<0.000000e+00> : vector<8x32xf32>
    %30 = tpu.matmul %24, %29, %cst_12 {dimension_numbers = #tpu.dot_dimension_numbers<[1], [0], [0], [1], [0, 0, 1, 1], [], []>} : vector<8x256xf32>, vector<256x32xf32>, vector<8x32xf32> -> vector<8x32xf32>
    %31 = vector.broadcast %25 : vector<1x32xf32> to vector<8x32xf32>
    %32 = arith.addf %30, %31 : vector<8x32xf32>
    %cst_13 = arith.constant dense<0.000000e+00> : vector<8xf32>
    %33 = vector.multi_reduction <add>, %32, %cst_13 [1] : vector<8x32xf32> to vector<8xf32>
    %34 = vector.shape_cast %33 : vector<8xf32> to vector<8x1xf32>
    %cst_14 = arith.constant 3.200000e+01 : f32
    %35 = vector.broadcast %cst_14 : f32 to vector<8x1xf32>
    %36 = arith.divf %34, %35 : vector<8x1xf32>
    %37 = vector.broadcast %36 : vector<8x1xf32> to vector<8x32xf32>
    %38 = arith.subf %32, %37 : vector<8x32xf32>
    %39 = arith.mulf %38, %38 : vector<8x32xf32>
    %cst_15 = arith.constant dense<0.000000e+00> : vector<8xf32>
    %40 = vector.multi_reduction <add>, %39, %cst_15 [1] : vector<8x32xf32> to vector<8xf32>
    %41 = vector.shape_cast %40 : vector<8xf32> to vector<8x1xf32>
    %cst_16 = arith.constant 3.200000e+01 : f32
    %42 = vector.broadcast %cst_16 : f32 to vector<8x1xf32>
    %43 = arith.divf %41, %42 : vector<8x1xf32>
    %44 = vector.broadcast %36 : vector<8x1xf32> to vector<8x32xf32>
    %45 = arith.subf %32, %44 : vector<8x32xf32>
    %cst_17 = arith.constant 9.99999974E-6 : f32
    %46 = vector.broadcast %cst_17 : f32 to vector<8x1xf32>
    %47 = arith.addf %43, %46 : vector<8x1xf32>
    %48 = math.rsqrt %47 : vector<8x1xf32>
    %49 = vector.broadcast %48 : vector<8x1xf32> to vector<8x32xf32>
    %50 = arith.mulf %45, %49 : vector<8x32xf32>
    %51 = vector.broadcast %26 : vector<1x32xf32> to vector<8x32xf32>
    %52 = arith.mulf %50, %51 : vector<8x32xf32>
    %53 = vector.broadcast %27 : vector<1x32xf32> to vector<8x32xf32>
    %54 = arith.addf %52, %53 : vector<8x32xf32>
    %c0_18 = arith.constant 0 : index
    %c0_19 = arith.constant 0 : index
    %55 = vector.load %arg4[%c0_18, %c0_19] : memref<32x128xf32, #tpu.memory_space<vmem>>, vector<32x128xf32>
    %cst_20 = arith.constant dense<0.000000e+00> : vector<8x128xf32>
    %56 = tpu.matmul %54, %55, %cst_20 {dimension_numbers = #tpu.dot_dimension_numbers<[1], [0], [0], [1], [0, 0, 1, 1], [], []>} : vector<8x32xf32>, vector<32x128xf32>, vector<8x128xf32> -> vector<8x128xf32>
    %57 = vector.broadcast %28 : vector<1x128xf32> to vector<8x128xf32>
    %58 = arith.addf %56, %57 : vector<8x128xf32>
    %59 = math.tanh %58 : vector<8x128xf32>
    %c0_21 = arith.constant 0 : index
    %c0_22 = arith.constant 0 : index
    %60 = vector.load %arg6[%c0_21, %c0_22] : memref<8x128xf32, #tpu.memory_space<vmem>>, vector<8x128xf32>
    tpu.vector_store %arg6[%c0_21, %c0_22], %59 {strides = array<i32>} : memref<8x128xf32, #tpu.memory_space<vmem>>, vector<8x128xf32>,
    return
  }
  func.func @transform_0(%arg0: i32) -> (i32, i32) {
    %c0_i32 = arith.constant 0 : i32
    %c0_i32_0 = arith.constant 0 : i32
    return %arg0, %c0_i32 : i32, i32
  }
  func.func @transform_1(%arg0: i32) -> (i32, i32) {
    %c0_i32 = arith.constant 0 : i32
    %c0_i32_0 = arith.constant 0 : i32
    return %arg0, %c0_i32 : i32, i32
  }
  func.func @transform_2(%arg0: i32) -> (i32, i32) {
    %c0_i32 = arith.constant 0 : i32
    %c0_i32_0 = arith.constant 0 : i32
    %c0_i32_1 = arith.constant 0 : i32
    return %c0_i32, %c0_i32_0 : i32, i32
  }
  func.func @transform_3(%arg0: i32) -> (i32, i32) {
    %c0_i32 = arith.constant 0 : i32
    %c0_i32_0 = arith.constant 0 : i32
    %c0_i32_1 = arith.constant 0 : i32
    return %c0_i32, %c0_i32_0 : i32, i32
  }
  func.func @transform_4(%arg0: i32) -> (i32, i32) {
    %c0_i32 = arith.constant 0 : i32
    %c0_i32_0 = arith.constant 0 : i32
    %c0_i32_1 = arith.constant 0 : i32
    return %c0_i32, %c0_i32_0 : i32, i32
  }
  func.func @transform_5(%arg0: i32) -> (i32, i32) {
    %c0_i32 = arith.constant 0 : i32
    %c0_i32_0 = arith.constant 0 : i32
    return %arg0, %c0_i32 : i32, i32
  }
}

</mosaic_0001>

<bundles_post_ra>
// kernel: tpu_custom_call.1
= control target key start
LH: loop header
LB: loop body
LE: loop exit
PB: predicated region body
PF: predicated region fallthrough
CT: control target
= control target key end

     0   :  { %v394_v1 = vmov 0   ;;  %s584_s0 = inlined_call_operand.vmem [shape: f32[8,256], index: 0, kind: input, shape index: {}]   ;;  %s585_s1 = inlined_call_operand.vmem [shape: s32[8,1], index: 1, kind: input, shape index: {}]   ;;  %s586_s2 = inlined_call_operand.vmem [shape: f32[256,32], index: 2, kind: input, shape index: {}]   ;;  %s587_s3 = inlined_call_operand.vmem [shape: f32[32,128], index: 3, kind: input, shape index: {}]   ;;  %s588_s4 = inlined_call_operand.vmem [shape: f32[8,128], index: 4, kind: input, shape index: {}]   ;;  %s589_s5 = inlined_call_operand.hbm [shape: f32[8,128], index: 5, kind: output, shape index: {}]  }
   0x1   :  { %v23_v0 = vld [vmem:[%s585_s1] sm:$0xff]  ;;  %362 = vset.pattern.permute.xlu0 %v394_v1  ;;  %363 = vset.pattern.permute.xlu1 %v394_v1 }
   0x2   :  { %10 = vsyncpa [#allocation3], 0  ;;  %30 = vperm.xlu0 %362, %v23_v0   ;;  %v395_v2 = vmov 0.0   ;;  %v26_v3 = vlaneseq  ;;  %v21_v7 = vld [vmem:[%s584_s0] sm:$0xff]  ;;  %v22_v8 = vld [vmem:[%s584_s0 + $0x8] sm:$0xff]  ;;  %v24_v14 = vcvt.s32.f32 %v23_v0  ;;  %vm178_vm2 = vcmask 261120  }
   0x3   :  { %347 = vmatprep.subr.mxu1 %v395_v2  ;;  %v103_v26 = vld [vmem:[%s586_s2 + $0xf8] sm:$0xff]  ;;  %v102_v28 = vld [vmem:[%s586_s2 + $0xf0] sm:$0xff]  ;;  %v101_v30 = vld [vmem:[%s586_s2 + $0xe8] sm:$0xff]  ;;  %vm396_vm3 = vmmov 0   ;;  %s397_s21 = smov [#allocation2]  }
   0x4   :  { %v27_v4 = vand.u32 127, %v26_v3  ;;  %364 = vrcp.f32 %v24_v14  ;;  %v87_v27 = vld [vmem:[%s586_s2 + $0x78] sm:$0xff]  ;;  %307 = vmatprep.subr.mxu0 %v103_v26  ;;  %v86_v29 = vld [vmem:[%s586_s2 + $0x70] sm:$0xff]  ;;  %v85_v31 = vld [vmem:[%s586_s2 + $0x68] sm:$0xff]  ;;  %355 = vmatprep.mubr.msk.f32.mxu1 %vm396_vm3, %v395_v2  ;;  %s292_s22 = sshll.u32 %s397_s21, 4  ;;  %s293_s22 = int_to_ptr.vmem [resolvable:$true] %s292_s22 }
   0x5   :  { %308 = vmatpush3.msra.mxu0 %v87_v27  ;;  %v100_v32 = vld [vmem:[%s586_s2 + $0xe0] sm:$0xff]  ;;  %v99_v34 = vld [vmem:[%s586_s2 + $0xd8] sm:$0xff]  ;;  %v98_v36 = vld [vmem:[%s586_s2 + $0xd0] sm:$0xff]  ;;  %s372_s23 = scalar_lea.vmem %s293_s22, 128  ;;  %p377_p1 = scmp.lt.s32.totalorder %s293_s22, %s293_s22 }
   0x6   :  { %v28_v5 = vadd.s32 128, %v27_v4  ;;  %309 = vmatprep.subr.mxu0 %v102_v28  ;;  %v84_v33 = vld [vmem:[%s586_s2 + $0x60] sm:$0xff]  ;;  %v83_v35 = vld [vmem:[%s586_s2 + $0x58] sm:$0xff]  ;;  %v82_v37 = vld [vmem:[%s586_s2 + $0x50] sm:$0xff]  ;;  %p373_p0 = scmp.ne.s32.totalorder %s293_s22, %s372_s23  ;;  %p378_p2 = scmp.lt.s32.totalorder %s372_s23, %s372_s23 }
   0x7   :  { %310 = vmatpush3.msra.mxu0 %v86_v29  ;;  %v97_v38 = vld [vmem:[%s586_s2 + $0xc8] sm:$0xff]  ;;  %v96_v40 = vld [vmem:[%s586_s2 + $0xc0] sm:$0xff]  ;;  %v95_v42 = vld [vmem:[%s586_s2 + $0xb8] sm:$0xff] }
   0x8   :  { %311 = vmatprep.subr.mxu0 %v101_v30  ;;  %v81_v39 = vld [vmem:[%s586_s2 + $0x48] sm:$0xff]  ;;  %v80_v41 = vld [vmem:[%s586_s2 + $0x40] sm:$0xff]  ;;  %v79_v43 = vld [vmem:[%s586_s2 + $0x38] sm:$0xff]  ;;  %p379_p3 = por %p378_p2, %p377_p1 }
   0x9   :  { %312 = vmatpush3.msra.mxu0 %v85_v31  ;;  %v94_v44 = vld [vmem:[%s586_s2 + $0xb0] sm:$0xff]  ;;  %v93_v46 = vld [vmem:[%s586_s2 + $0xa8] sm:$0xff]  ;;  %v92_v48 = vld [vmem:[%s586_s2 + $0xa0] sm:$0xff] }
   0xa   :  { %313 = vmatprep.subr.mxu0 %v100_v32  ;;  %v78_v45 = vld [vmem:[%s586_s2 + $0x30] sm:$0xff]  ;;  %v77_v47 = vld [vmem:[%s586_s2 + $0x28] sm:$0xff]  ;;  %v76_v49 = vld [vmem:[%s586_s2 + $0x20] sm:$0xff]  ;;  %p380_p4 = pnand %p379_p3, %p373_p0 }
   0xb   :  { %314 = vmatpush3.msra.mxu0 %v84_v33  ;;  %v91_v50 = vld [vmem:[%s586_s2 + $0x98] sm:$0xff]  ;;  %v90_v52 = vld [vmem:[%s586_s2 + $0x90] sm:$0xff]  ;;  %v89_v54 = vld [vmem:[%s586_s2 + $0x88] sm:$0xff] }
   0xc   :  { %315 = vmatprep.subr.mxu0 %v99_v34  ;;  %v75_v51 = vld [vmem:[%s586_s2 + $0x18] sm:$0xff]  ;;  %v74_v53 = vld [vmem:[%s586_s2 + $0x10] sm:$0xff]  ;;  %v73_v58 = vld [vmem:[%s586_s2 + $0x8] sm:$0xff] }
   0xd   :  { %316 = vmatpush3.msra.mxu0 %v83_v35  ;;  %v88_v59 = vld [vmem:[%s586_s2 + $0x80] sm:$0xff]  ;;  %v205_v14 = vld [vmem:[%s587_s3 + $0x10] sm:$0xff] }
   0xe   :  { %317 = vmatprep.subr.mxu0 %v98_v36  ;;  %v72_v60 = vld [vmem:[%s586_s2] sm:$0xff] }
   0xf   :  { %318 = vmatpush3.msra.mxu0 %v82_v37 }
  0x10   :  { %319 = vmatprep.subr.mxu0 %v97_v38 }
  0x11   :  { %v440_v15 = vpop.eup %364  ;;  %320 = vmatpush3.msra.mxu0 %v81_v39 }
  0x12   :  { %321 = vmatprep.subr.mxu0 %v96_v40 }
  0x13   :  { %322 = vmatpush3.msra.mxu0 %v80_v41 }
  0x14   :  { %323 = vmatprep.subr.mxu0 %v95_v42 }
  0x15   :  { %324 = vmatpush3.msra.mxu0 %v79_v43 }
  0x16   :  { %325 = vmatprep.subr.mxu0 %v94_v44 }
  0x17   :  { %326 = vmatpush3.msra.mxu0 %v78_v45 }
  0x18   :  { %327 = vmatprep.subr.mxu0 %v93_v46 }
  0x19   :  { %328 = vmatpush3.msra.mxu0 %v77_v47 }
  0x1a   :  { %329 = vmatprep.subr.mxu0 %v92_v48 }
  0x1b   :  { %330 = vmatpush3.msra.mxu0 %v76_v49 }
  0x1c   :  { %331 = vmatprep.subr.mxu0 %v91_v50 }
  0x1d   :  { %332 = vmatpush3.msra.mxu0 %v75_v51 }
  0x1e   :  { %333 = vmatprep.subr.mxu0 %v90_v52 }
  0x1f   :  { %334 = vmatpush3.msra.mxu0 %v74_v53 }
  0x20   :  { %335 = vmatprep.subr.mxu0 %v89_v54 }
  0x21   :  { %336 = vmatpush3.msra.mxu0 %v73_v58 }
  0x22   :  { %337 = vmatprep.subr.mxu0 %v88_v59 }
  0x23   :  { %338 = vmatpush3.msra.mxu0 %v72_v60 }
  0x7d   :  { %v31_v6 = vpop.permute.xlu0 %30 }
  0x7e   :  { %vm32_vm0 = vcmp.lt.s32.totalorder %v27_v4, %v31_v6  ;;  %vm33_vm1 = vcmp.lt.s32.totalorder %v28_v5, %v31_v6  ;;  %v302_v4 = vld [vmem:[%s588_s4] ss:$0 sm:$0xff] }
  0x7f   :  { %v300_v9 = vsel %vm32_vm0, 1.0, %v395_v2  ;;  %v301_v10 = vsel %vm33_vm1, 1.0, %v395_v2 }
  0x80   :  { %v38_v11 = vmul.f32 %v300_v9, %v21_v7  ;;  %v39_v12 = vmul.f32 %v301_v10, %v22_v8 }
  0x82   :  { %v40_v13 = vadd.f32 %v39_v12, %v38_v11 }
  0x84   :  { %41 = vadd.xlane.f32.xlu0 %v40_v13  ;;  %v206_v13 = vld [vmem:[%s587_s3 + $0x18] sm:$0xff] }
  0x85   :  { %348 = vmatpush3.msra.mxu1 %v206_v13 }
  0x86   :  { %349 = vmatprep.subr.mxu1 %v395_v2 }
  0x87   :  { %350 = vmatpush3.msra.mxu1 %v205_v14 }
  0x88   :  { %351 = vmatprep.subr.mxu1 %v395_v2 }
 0x10d   :  { %v42_v16 = vpop.xlane.xlu0 %41 }
 0x10e   :  { %v43_v17 = vmul.f32 %v440_v15, %v42_v16  ;;  %v203_v16 = vld [vmem:[%s587_s3] sm:$0xff] }
 0x110   :  { %46 = vperm.xlu1 %363, %v43_v17  }
 0x18b   :  { %v47_v18 = vpop.permute.xlu1 %46 }
 0x18c   :  { %v49_v19 = vsub.f32 %v21_v7, %v47_v18  ;;  %v50_v20 = vsub.f32 %v22_v8, %v47_v18 }
 0x18e   :  { %v443_v21 = vmul.f32 %v300_v9, %v49_v19  ;;  %v445_v22 = vmul.f32 %v301_v10, %v50_v20 }
 0x190   :  { %v53_v23 = vmul.f32 %v443_v21, %v443_v21  ;;  %v54_v24 = vmul.f32 %v445_v22, %v445_v22 }
 0x192   :  { %v55_v25 = vadd.f32 %v54_v24, %v53_v23  ;;  %v304_v23 = vld [vmem:[%s588_s4 + $0x2] ss:$0 sm:$0xff] }
 0x194   :  { %56 = vadd.xlane.f32.xlu1 %v55_v25 }
 0x21d   :  { %v57_v55 = vpop.xlane.xlu1 %56 }
 0x21e   :  { %v58_v56 = vmul.f32 %v440_v15, %v57_v55  ;;  %v204_v15 = vld [vmem:[%s587_s3 + $0x8] sm:$0xff] }
 0x21f   :  { %352 = vmatpush3.msra.mxu1 %v204_v15 }
 0x220   :  { %v59_v57 = vadd.f32 1e-07, %v58_v56  ;;  %353 = vmatprep.subr.mxu1 %v395_v2  ;;  %v305_v2 = vld [vmem:[%s588_s4 + $0x3] ss:$0 sm:$0xff] }
 0x221   :  { %354 = vmatpush3.msra.mxu1 %v203_v16 }
 0x222   :  { %366 = vrsqrt.f32 %v59_v57 }
 0x22f   :  { %v367_v61 = vpop.eup %366 }
 0x230   :  { %63 = vperm.xlu0 %362, %v367_v61  }
 0x2ab   :  { %v64_v62 = vpop.permute.xlu0 %63 }
 0x2ac   :  { %v66_v63 = vmul.f32 %v64_v62, %v443_v21  ;;  %v67_v0 = vmul.f32 %v64_v62, %v445_v22  ;;  %v303_v21 = vld [vmem:[%s588_s4 + $0x1] ss:$0 sm:$0xff] }
 0x2ae   :  { %172 = vmatprep.mubr.f32.mxu0 %v67_v0 }
 0x2af   :  { %173 = vmatmul.mubr.f32.vlgmr.msra.gmra.mxu0 %v66_v63 }
 0x36f   :  { %v339_v1 = vpop.f32.mrf.mxu0 }
 0x371   :  { %v340_v3 = vpop.f32.mrf.mxu0 }
 0x372   :  { %v341_v5 = vadd.f32 %v340_v3, %v339_v1 }
 0x374   :  { %v175_v6 = vadd.f32 %v341_v5, %v302_v4 }
 0x376   :  { %v179_v7 = vsel %vm178_vm2, %v175_v6, 0.0 }
 0x377   :  { %180 = vadd.xlane.f32.xlu1 %v179_v7 }
 0x400   :  { %v181_v8 = vpop.xlane.xlu1 %180 }
 0x401   :  { %v183_v9 = vmul.f32 0.03125, %v181_v8 }
 0x403   :  { %v184_v10 = vsub.f32 %v175_v6, %v183_v9 }
 0x405   :  { %v185_v11 = vmul.f32 %v184_v10, %v184_v10 }
 0x407   :  { %v186_v12 = vsel %vm178_vm2, %v185_v11, 0.0 }
 0x408   :  { %187 = vadd.xlane.f32.xlu1 %v186_v12 }
 0x491   :  { %v188_v17 = vpop.xlane.xlu1 %187 }
 0x492   :  { %v189_v18 = vmul.f32 0.03125, %v188_v17 }
 0x494   :  { %v190_v19 = vadd.f32 1e-05, %v189_v18 }
 0x496   :  { %368 = vrsqrt.f32 %v190_v19 }
 0x4a3   :  { %v369_v20 = vpop.eup %368 }
 0x4a4   :  { %v192_v22 = vmul.f32 %v369_v20, %v184_v10 }
 0x4a6   :  { %v197_v24 = vmul.f32 %v303_v21, %v192_v22 }
 0x4a8   :  { %v202_v25 = vadd.f32 %v304_v23, %v197_v24 }
 0x4aa   :  { %356 = vmatmul.mubr.msk.f32.vlgmr.msra.gmra.mxu1 %vm178_vm2, %v202_v25 }
 0x56a   :  { %v280_v26 = vpop.f32.mrf.mxu1 }
 0x56b   :  { %v281_v27 = vadd.f32 %v305_v2, %v280_v26 }
 0x56c   :  { %v357_v28 = vpop.f32.mrf.mxu1 }
 0x56d   :  { %370 = vtanh.f32 %v281_v27 }
 0x57a   :  { %v371_v29 = vpop.eup %370 }
 0x57b   :  { %285 = vst [vmem:[#allocation2] sm:$0xff] %v371_v29 }
 0x57c   :  { %383 = shalt.err (!%p380_p4)
}
 0x57d   :  { %295 = dma.vmem_to_hbm [thread:$0]  %s293_s22, 128, %s589_s5, [#allocation3]  }
 0x57e   :  { %392 = dma.done.wait [#allocation3], 128  }
 0x57f   :  { %393 = vsyncadd [#allocation3], 4294967168 }
 0x580   :  { %299 = vsyncpa [#allocation3], 1 }

</bundles_post_ra>
